<compile_context>
chip_gen: v5e
topology: v5e:2x2
jax: 0.10.0
libtpu: 0.0.40
codegen_flags: <defaults>
</compile_context>

<pallas_src>
import math

import jax
import jax.numpy as jnp
from jax.experimental import pallas as pl
from jax.experimental.pallas import tpu as pltpu


def _layer_scale_kernel(x_ref, gamma_ref, o_ref):
    # (tm, L) * (1, L) -> (tm, L), broadcast over sublanes, pure VPU work.
    o_ref[...] = x_ref[...] * gamma_ref[...]


def layer_scale(x, gamma, *, target_block_bytes=2 * 1024 * 1024):
    """x: (..., D) array, gamma: (D,) array. Returns x * gamma (same shape/dtype as x)."""
    orig_shape = x.shape
    D = orig_shape[-1]
    assert gamma.shape == (D,), f"gamma must be ({D},), got {gamma.shape}"

    dtype = x.dtype
    itemsize = jnp.dtype(dtype).itemsize
    gamma = gamma.astype(dtype)

    total = math.prod(orig_shape)

    # ---- choose a lane-dense width L: multiple of both D and 128, >= 512 ----
    L = (D * 128) // math.gcd(D, 128)  # lcm(D, 128)
    while L < 512:
        L *= 2
    reps = L // D
    gamma_row = jnp.tile(gamma, reps).reshape(1, L)

    # ---- choose row tile (multiple of 8, ~target_block_bytes per block) ----
    rows = -(-total // L)  # cdiv
    tm = target_block_bytes // (L * itemsize)
    tm = max(8, (tm // 8) * 8)
    tm = min(tm, ((rows + 7) // 8) * 8)        # don't exceed (rounded-up) rows
    rows_padded = -(-rows // tm) * tm
    padded_total = rows_padded * L

    # ---- flatten + zero-pad so the grid covers whole tiles exactly ----
    x_flat = x.reshape(-1)
    if padded_total != total:
        x_flat = jnp.pad(x_flat, (0, padded_total - total))
    x2d = x_flat.reshape(rows_padded, L)

    grid = (rows_padded // tm,)

    out2d = pl.pallas_call(
        _layer_scale_kernel,
        out_shape=jax.ShapeDtypeStruct((rows_padded, L), dtype),
        grid_spec=pltpu.PrefetchScalarGridSpec(
            num_scalar_prefetch=0,
            grid=grid,
            in_specs=[
                pl.BlockSpec((tm, L), lambda i: (i, 0)),
                # gamma: tiny, fully resident in VMEM (no per-step DMA).
                pl.BlockSpec(memory_space=pltpu.MemorySpace.VMEM),
            ],
            out_specs=pl.BlockSpec((tm, L), lambda i: (i, 0)),
        ),
        compiler_params=pltpu.CompilerParams(
            dimension_semantics=("parallel",),
            # 2x(in tile) + 2x(out tile) + gamma with ample headroom; stays
            # well under 64 MiB physical VMEM on v7x.
            vmem_limit_bytes=32 * 1024 * 1024,
        ),
    )(x2d, gamma_row)

    out_flat = out2d.reshape(-1)
    if padded_total != total:
        out_flat = out_flat[:total]
    return out_flat.reshape(orig_shape)


if __name__ == "__main__":
    # Module config: LayerScale(dim=32, init_values=1e-5)
    dim = 32
    init_values = 1e-5
    gamma = init_values * jnp.ones((dim,), dtype=jnp.float32)  # deterministic init

    # Example input consistent with transformer usage: (batch, seq, dim)
    key = jax.random.PRNGKey(0)
    x = jax.random.normal(key, (2, 8, dim), dtype=jnp.float32)

    y = layer_scale(x, gamma)
    jax.block_until_ready(y)

    # Correctness check against plain JAX reference
    y_ref = x * gamma
    assert y.shape == x.shape and y.dtype == x.dtype
    assert jnp.allclose(y, y_ref, atol=1e-6, rtol=1e-6)
    print("KERNEL_OK")
</pallas_src>

<mosaic_0001>
module attributes {stable_mosaic.version = 11 : i64} {
  func.func @_layer_scale_kernel(%arg0: i32, %arg1: memref<8x512xf32, #tpu.memory_space<vmem>>, %arg2: memref<1x512xf32, #tpu.memory_space<vmem>>, %arg3: memref<8x512xf32, #tpu.memory_space<vmem>>) attributes {dimension_semantics = [#tpu.dimension_semantics<parallel>], iteration_bounds = array<i64: 1>, scalar_prefetch = 0 : i64, scratch_operands = 0 : i64, tpu.core_type = #tpu.core_type<tc>, window_params = [{transform_indices = @transform_0, window_bounds = array<i64: 8, 512>}, {pipeline_mode = #tpu.pipeline_mode<synchronous>, transform_indices = @transform_1, window_bounds = array<i64: 1, 512>}, {transform_indices = @transform_2, window_bounds = array<i64: 8, 512>}]} {
    %c0 = arith.constant 0 : index
    %c0_0 = arith.constant 0 : index
    %0 = vector.load %arg1[%c0, %c0_0] : memref<8x512xf32, #tpu.memory_space<vmem>>, vector<8x512xf32>
    %c0_1 = arith.constant 0 : index
    %c0_2 = arith.constant 0 : index
    %1 = vector.load %arg2[%c0_1, %c0_2] : memref<1x512xf32, #tpu.memory_space<vmem>>, vector<1x512xf32>
    %2 = vector.broadcast %1 : vector<1x512xf32> to vector<8x512xf32>
    %3 = arith.mulf %0, %2 : vector<8x512xf32>
    %c0_3 = arith.constant 0 : index
    %c0_4 = arith.constant 0 : index
    %4 = vector.load %arg3[%c0_3, %c0_4] : memref<8x512xf32, #tpu.memory_space<vmem>>, vector<8x512xf32>
    tpu.vector_store %arg3[%c0_3, %c0_4], %3 {strides = array<i32>} : memref<8x512xf32, #tpu.memory_space<vmem>>, vector<8x512xf32>,
    return
  }
  func.func @transform_0(%arg0: i32) -> (i32, i32) {
    %c0_i32 = arith.constant 0 : i32
    %c0_i32_0 = arith.constant 0 : i32
    return %arg0, %c0_i32 : i32, i32
  }
  func.func @transform_1(%arg0: i32) -> (i32, i32) {
    %c0_i32 = arith.constant 0 : i32
    %c0_i32_0 = arith.constant 0 : i32
    %c0_i32_1 = arith.constant 0 : i32
    return %c0_i32, %c0_i32_0 : i32, i32
  }
  func.func @transform_2(%arg0: i32) -> (i32, i32) {
    %c0_i32 = arith.constant 0 : i32
    %c0_i32_0 = arith.constant 0 : i32
    return %arg0, %c0_i32 : i32, i32
  }
}

</mosaic_0001>

<bundles_post_ra>
// kernel: tpu_custom_call.1
= control target key start
LH: loop header
LB: loop body
LE: loop exit
PB: predicated region body
PF: predicated region fallthrough
CT: control target
= control target key end

     0   :  { %7 = vsyncpa [#allocation3], 0  ;;  %s188_s0 = inlined_call_operand.hbm [shape: f32[8,512], index: 0, kind: input, shape index: {}]   ;;  %s189_s1 = inlined_call_operand.hbm [shape: f32[1,512], index: 1, kind: input, shape index: {}]   ;;  %s190_s2 = inlined_call_operand.hbm [shape: f32[8,512], index: 2, kind: output, shape index: {}]  }
   0x1   :  { %8 = vsyncpa [#allocation6], 0 }
   0x2   :  { %9 = vsyncpa [#allocation4], 0  ;;  %s15_s11 = sshll.u32 %s188_s0, 4  ;;  %s161_s12 = smov [#allocation2]   ;;  %s16_s11 = int_to_ptr.hbm [resolvable:$true] %s15_s11 }
   0x3   :  { %s17_s13 = sshll.u32 %s161_s12, 4  ;;  %s26_s16 = sshll.u32 %s189_s1, 4  ;;  %s18_s13 = int_to_ptr.vmem [resolvable:$true] %s17_s13  ;;  %s27_s16 = int_to_ptr.hbm [resolvable:$true] %s26_s16 }
   0x4   :  { %20 = dma.hbm_to_vmem [thread:$0]  %s16_s11, 512, %s18_s13, [#allocation3]  }
   0x5   :  { %s162_s17 = smov [#allocation5]  }
   0x6   :  { %s28_s18 = sshll.u32 %s162_s17, 4  ;;  %s29_s18 = int_to_ptr.vmem [resolvable:$true] %s28_s18 }
   0x7   :  { %31 = dma.hbm_to_vmem [thread:$0]  %s27_s16, 64, %s29_s18, [#allocation6]  }
   0x8   :  { %155 = dma.done.wait [#allocation3], 512  }
   0x9   :  { %156 = vsyncadd [#allocation3], 4294966784 }
   0xa   :  { %157 = dma.done.wait [#allocation6], 64  }
   0xb   :  { %158 = vsyncadd [#allocation6], 4294967232  ;;  %v40_v0 = vld [vmem:[#allocation2] sm:$0xff]  ;;  %v41_v2 = vld [vmem:[#allocation2 + $0x8] sm:$0xff]  ;;  %s163_s0 = smov [#allocation7]   ;;  %s69_s21 = sshll.u32 %s190_s2, 4  ;;  %s70_s21 = int_to_ptr.hbm [resolvable:$true] %s69_s21 }
   0xc   :  { %v44_v1 = vld [vmem:[#allocation5] sm:$0xf]  ;;  %v42_v5 = vld [vmem:[#allocation2 + $0x10] sm:$0xff]  ;;  %v43_v7 = vld [vmem:[#allocation2 + $0x18] sm:$0xff]  ;;  %s67_s1 = sshll.u32 %s163_s0, 4  ;;  %s68_s1 = int_to_ptr.vmem [resolvable:$true] %s67_s1 }
   0xd   :  { %v46_v3 = vperm.slane %v44_v1, 0  ;;  %v47_v4 = vperm.slane %v44_v1, 1  ;;  %v48_v6 = vperm.slane %v44_v1, 2  ;;  %v49_v8 = vperm.slane %v44_v1, 3 }
   0xf   :  { %v54_v9 = vmul.f32 %v46_v3, %v40_v0  ;;  %v55_v10 = vmul.f32 %v47_v4, %v41_v2  ;;  %v56_v11 = vmul.f32 %v48_v6, %v42_v5  ;;  %v57_v12 = vmul.f32 %v49_v8, %v43_v7 }
  0x11   :  { %58 = vst [vmem:[#allocation7] sm:$0xff] %v54_v9 }
  0x12   :  { %59 = vst [vmem:[#allocation7 + $0x8] sm:$0xff] %v55_v10 }
  0x13   :  { %60 = vst [vmem:[#allocation7 + $0x10] sm:$0xff] %v56_v11 }
  0x14   :  { %61 = vst [vmem:[#allocation7 + $0x18] sm:$0xff] %v57_v12 }
  0x15   :  { %72 = dma.vmem_to_hbm [thread:$0]  %s68_s1, 512, %s70_s21, [#allocation4]  }
  0x16   :  { %159 = dma.done.wait [#allocation4], 512  }
  0x17   :  { %160 = vsyncadd [#allocation4], 4294966784 }
  0x18   :  { %77 = vsyncpa [#allocation3], 1 }
  0x19   :  { %78 = vsyncpa [#allocation6], 1 }
  0x1a   :  { %79 = vsyncpa [#allocation4], 1 }

</bundles_post_ra>
